<compile_context>
chip_gen: v7x
topology: tpu7x:2x2x1
jax: 0.10.0
libtpu: 0.0.40
codegen_flags: <defaults>
</compile_context>

<pallas_src>
import jax
import jax.numpy as jnp
from jax import lax
from jax.experimental import pallas as pl
from jax.experimental.pallas import tpu as pltpu

_EPS = 1e-5  # torch.nn.BatchNorm2d default eps


def _bn_tanh_kernel(x_ref, gb_ref, o_ref):
    # x_ref: (N, C, HW) f32; gb_ref: (2, C, 1) f32 holding [gamma; beta]
    x = x_ref[...]
    n, c, hw = x.shape
    inv_m = 1.0 / float(n * hw)

    # Fused single-pass statistics: one materialization of x, two independent
    # reductions (sum and sum-of-squares) over (N, HW).
    xs = jnp.sum(x, axis=0)                       # (C, HW)  VPU add over N
    x2s = jnp.sum(x * x, axis=0)                  # (C, HW)
    s1 = jnp.sum(xs, axis=-1, keepdims=True)      # (C, 1)   XLU lane reduce
    s2 = jnp.sum(x2s, axis=-1, keepdims=True)     # (C, 1)

    mean = s1 * inv_m                             # (C, 1)
    # Biased variance (torch training-mode fwd); clamp against cancellation so
    # rsqrt never sees a negative argument.
    var = jnp.maximum(s2 * inv_m - mean * mean, 0.0)
    inv_std = lax.rsqrt(var + _EPS)               # EUP

    gb = gb_ref[...]                              # (2, C, 1)
    scale = gb[0] * inv_std                       # gamma / sqrt(var + eps)
    shift = gb[1] - mean * scale                  # beta  - mean * scale

    # MaxPool2d(kernel_size=1, stride=1) is the identity -> nothing to do.
    o_ref[...] = jnp.tanh(x * scale[None] + shift[None])   # tanh on EUP


def model_tanh_forward(x_nchw, gamma, beta):
    """x_nchw: (N, C, H, W) float32; gamma/beta: (C,) float32."""
    n, c, h, w = x_nchw.shape
    hw = h * w

    # Free, contiguous reshape: NCHW -> (N, C, H*W). No HBM transpose.
    x3 = x_nchw.reshape(n, c, hw)
    gb = jnp.stack([gamma, beta]).reshape(2, c, 1).astype(x3.dtype)

    cost = pl.CostEstimate(
        flops=8 * n * c * hw,                 # sums, sumsq, scale, shift
        transcendentals=n * c * hw + c,       # tanh per element + rsqrt per C
        bytes_accessed=2 * n * c * hw * 4 + 2 * c * 4,
    )

    # Overhead-bound problem: no grid, no pipeline. Whole arrays live in VMEM
    # for the single kernel invocation.
    out3 = pl.pallas_call(
        _bn_tanh_kernel,
        out_shape=jax.ShapeDtypeStruct((n, c, hw), x3.dtype),
        in_specs=[
            pl.BlockSpec(memory_space=pltpu.MemorySpace.VMEM),
            pl.BlockSpec(memory_space=pltpu.MemorySpace.VMEM),
        ],
        out_specs=pl.BlockSpec(memory_space=pltpu.MemorySpace.VMEM),
        cost_estimate=cost,
    )(x3, gb)

    # Free reshape back to NCHW.
    return out3.reshape(n, c, h, w)


if __name__ == "__main__":
    key = jax.random.PRNGKey(0)
    N, C, H, W = 2, 9, 16, 16
    x = jax.random.normal(key, (N, C, H, W), dtype=jnp.float32)

    # Deterministic BatchNorm2d(9) parameters (same as a fresh torch module).
    gamma = jnp.ones((C,), dtype=jnp.float32)
    beta = jnp.zeros((C,), dtype=jnp.float32)

    out = model_tanh_forward(x, gamma, beta)
    jax.block_until_ready(out)

    # Sanity check against pure-JAX reference (centered two-pass form).
    mean = jnp.mean(x, axis=(0, 2, 3), keepdims=True)
    var = jnp.mean((x - mean) ** 2, axis=(0, 2, 3), keepdims=True)
    ref = jnp.tanh((x - mean) * lax.rsqrt(var + _EPS)
                   * gamma.reshape(1, C, 1, 1) + beta.reshape(1, C, 1, 1))
    assert out.shape == (N, C, H, W)
    assert jnp.max(jnp.abs(out - ref)) < 1e-4

    print("KERNEL_OK")
</pallas_src>

<mosaic_0001>
module attributes {stable_mosaic.version = 11 : i64} {
  func.func @_bn_tanh_kernel(%arg0: memref<2x9x256xf32, #tpu.memory_space<vmem>>, %arg1: memref<2x9x1xf32, #tpu.memory_space<vmem>>, %arg2: memref<2x9x256xf32, #tpu.memory_space<vmem>>) attributes {dimension_semantics = [], scalar_prefetch = 0 : i64, scratch_operands = 0 : i64, tpu.core_type = #tpu.core_type<tc>} {
    %c0 = arith.constant 0 : index
    %c0_0 = arith.constant 0 : index
    %c0_1 = arith.constant 0 : index
    %0 = vector.load %arg0[%c0, %c0_0, %c0_1] : memref<2x9x256xf32, #tpu.memory_space<vmem>>, vector<2x9x256xf32>
    %cst = arith.constant dense<0.000000e+00> : vector<9x256xf32>
    %1 = vector.multi_reduction <add>, %0, %cst [0] : vector<2x9x256xf32> to vector<9x256xf32>
    %2 = arith.mulf %0, %0 : vector<2x9x256xf32>
    %cst_2 = arith.constant dense<0.000000e+00> : vector<9x256xf32>
    %3 = vector.multi_reduction <add>, %2, %cst_2 [0] : vector<2x9x256xf32> to vector<9x256xf32>
    %cst_3 = arith.constant dense<0.000000e+00> : vector<9xf32>
    %4 = vector.multi_reduction <add>, %1, %cst_3 [1] : vector<9x256xf32> to vector<9xf32>
    %5 = vector.shape_cast %4 : vector<9xf32> to vector<9x1xf32>
    %cst_4 = arith.constant dense<0.000000e+00> : vector<9xf32>
    %6 = vector.multi_reduction <add>, %3, %cst_4 [1] : vector<9x256xf32> to vector<9xf32>
    %7 = vector.shape_cast %6 : vector<9xf32> to vector<9x1xf32>
    %cst_5 = arith.constant 0.001953125 : f32
    %8 = vector.broadcast %cst_5 : f32 to vector<9x1xf32>
    %9 = arith.mulf %5, %8 : vector<9x1xf32>
    %cst_6 = arith.constant 0.001953125 : f32
    %10 = vector.broadcast %cst_6 : f32 to vector<9x1xf32>
    %11 = arith.mulf %7, %10 : vector<9x1xf32>
    %12 = arith.mulf %9, %9 : vector<9x1xf32>
    %13 = arith.subf %11, %12 : vector<9x1xf32>
    %cst_7 = arith.constant 0.000000e+00 : f32
    %14 = vector.broadcast %cst_7 : f32 to vector<9x1xf32>
    %15 = arith.maximumf %13, %14 : vector<9x1xf32>
    %cst_8 = arith.constant 9.99999974E-6 : f32
    %16 = vector.broadcast %cst_8 : f32 to vector<9x1xf32>
    %17 = arith.addf %15, %16 : vector<9x1xf32>
    %18 = math.rsqrt %17 : vector<9x1xf32>
    %c0_9 = arith.constant 0 : index
    %c0_10 = arith.constant 0 : index
    %c0_11 = arith.constant 0 : index
    %19 = vector.load %arg1[%c0_9, %c0_10, %c0_11] : memref<2x9x1xf32, #tpu.memory_space<vmem>>, vector<2x9x1xf32>
    %20 = vector.extract_strided_slice %19 {offsets = [0, 0, 0], sizes = [1, 9, 1], strides = [1, 1, 1]} : vector<2x9x1xf32> to vector<1x9x1xf32>
    %21 = vector.shape_cast %20 : vector<1x9x1xf32> to vector<9x1xf32>
    %22 = arith.mulf %21, %18 : vector<9x1xf32>
    %23 = vector.extract_strided_slice %19 {offsets = [1, 0, 0], sizes = [1, 9, 1], strides = [1, 1, 1]} : vector<2x9x1xf32> to vector<1x9x1xf32>
    %24 = vector.shape_cast %23 : vector<1x9x1xf32> to vector<9x1xf32>
    %25 = arith.mulf %9, %22 : vector<9x1xf32>
    %26 = arith.subf %24, %25 : vector<9x1xf32>
    %27 = vector.shape_cast %22 : vector<9x1xf32> to vector<1x9x1xf32>
    %28 = vector.broadcast %27 : vector<1x9x1xf32> to vector<2x9x256xf32>
    %29 = arith.mulf %0, %28 : vector<2x9x256xf32>
    %30 = vector.shape_cast %26 : vector<9x1xf32> to vector<1x9x1xf32>
    %31 = vector.broadcast %30 : vector<1x9x1xf32> to vector<2x9x256xf32>
    %32 = arith.addf %29, %31 : vector<2x9x256xf32>
    %33 = math.tanh %32 : vector<2x9x256xf32>
    %c0_12 = arith.constant 0 : index
    %c0_13 = arith.constant 0 : index
    %c0_14 = arith.constant 0 : index
    %34 = vector.load %arg2[%c0_12, %c0_13, %c0_14] : memref<2x9x256xf32, #tpu.memory_space<vmem>>, vector<2x9x256xf32>
    tpu.vector_store %arg2[%c0_12, %c0_13, %c0_14], %33 {strides = array<i32>} : memref<2x9x256xf32, #tpu.memory_space<vmem>>, vector<2x9x256xf32>,
    return
  }
}

</mosaic_0001>

<bundles_post_ra>
// kernel: tpu_custom_call.1
= control target key start
LH: loop header
LB: loop body
LE: loop exit
PB: predicated region body
PF: predicated region fallthrough
CT: control target
= control target key end

     0   :  { %vm21_vm0 = vcmask 1040384   ;;  %v163_v40 = vmov 0   ;;  %s299_s0 = inlined_call_operand.vmem [shape: f32[2,9,256], index: 0, kind: input, shape index: {}]   ;;  %s300_s1 = inlined_call_operand.vmem [shape: f32[2,9,1], index: 1, kind: input, shape index: {}]   ;;  %s301_s2 = inlined_call_operand.vmem [shape: f32[2,9,256], index: 2, kind: output, shape index: {}]  }
   0x1   :  { %v182_v0 = vld [vmem:[%s299_s0] sm:$0xff]  ;;  %v187_v1 = vld [vmem:[%s299_s0 + $0x8] sm:$0xff]  ;;  %v210_v8 = vld [vmem:[%s299_s0 + $0x10] sm:$0x1]  ;;  %141 = vset.pattern.permute.xlu0 %v163_v40  ;;  %142 = vset.pattern.permute.xlu1 %v163_v40 }
   0x2   :  { %v192_v2 = vld [vmem:[%s299_s0 + $0x20] sm:$0xff]  ;;  %v197_v3 = vld [vmem:[%s299_s0 + $0x28] sm:$0xff]  ;;  %v28_v5 = vmul.f32 %v182_v0, %v182_v0  ;;  %v29_v6 = vmul.f32 %v187_v1, %v187_v1  ;;  %v215_v9 = vld [vmem:[%s299_s0 + $0x18] sm:$0x1]  ;;  %v22_v14 = vsel %vm21_vm0, %v210_v8, 0.0  ;;  %v30_v19 = vmul.f32 %v210_v8, %v210_v8 }
   0x3   :  { %v19_v4 = vadd.f32 %v192_v2, %v182_v0  ;;  %v32_v7 = vmul.f32 %v192_v2, %v192_v2  ;;  %v20_v10 = vadd.f32 %v197_v3, %v187_v1  ;;  %v33_v11 = vmul.f32 %v197_v3, %v197_v3  ;;  %v224_v12 = vld [vmem:[%s299_s0 + $0x30] sm:$0x1]  ;;  %v229_v13 = vld [vmem:[%s299_s0 + $0x38] sm:$0x1]  ;;  %v74_v57 = vld [vmem:[%s300_s1] sm:$0xff] }
   0x4   :  { %v25_v15 = vsel %vm21_vm0, %v215_v9, 0.0  ;;  %v23_v17 = vsel %vm21_vm0, %v224_v12, 0.0  ;;  %v26_v18 = vsel %vm21_vm0, %v229_v13, 0.0  ;;  %v31_v24 = vmul.f32 %v215_v9, %v215_v9  ;;  %v75_v60 = vld [vmem:[%s300_s1 + $0x8] sm:$0x1] }
   0x5   :  { %v36_v16 = vadd.f32 %v32_v7, %v28_v5  ;;  %v44_v20 = vadd.f32 %v20_v10, %v19_v4  ;;  %v37_v21 = vadd.f32 %v33_v11, %v29_v6  ;;  %v24_v22 = vadd.f32 %v23_v17, %v22_v14  ;;  %v76_v4 = vld [vmem:[%s300_s1 + $0x10] sm:$0xff]  ;;  %v77_v7 = vld [vmem:[%s300_s1 + $0x18] sm:$0x1] }
   0x6   :  { %v27_v23 = vadd.f32 %v26_v18, %v25_v15  ;;  %v34_v25 = vmul.f32 %v224_v12, %v224_v12  ;;  %v35_v26 = vmul.f32 %v229_v13, %v229_v13  ;;  %v38_v27 = vsel %vm21_vm0, %v30_v19, 0.0 }
   0x7   :  { %45 = vadd.xlane.f32.xlu0 %v44_v20  ;;  %v52_v28 = vadd.f32 %v37_v21, %v36_v16  ;;  %v47_v29 = vsel %vm21_vm0, %v24_v22, 0.0  ;;  %v41_v33 = vsel %vm21_vm0, %v31_v24, 0.0 }
   0x8   :  { %v48_v30 = vsel %vm21_vm0, %v27_v23, 0.0  ;;  %v39_v32 = vsel %vm21_vm0, %v34_v25, 0.0  ;;  %v42_v34 = vsel %vm21_vm0, %v35_v26, 0.0 }
   0x9   :  { %v49_v31 = vadd.f32 %v48_v30, %v47_v29  ;;  %53 = vadd.xlane.f32.xlu1 %v52_v28  ;;  %v40_v35 = vadd.f32 %v39_v32, %v38_v27  ;;  %v43_v36 = vadd.f32 %v42_v34, %v41_v33 }
   0xb   :  { %50 = vadd.xlane.f32.xlu0 %v49_v31  ;;  %v55_v37 = vsel %vm21_vm0, %v40_v35, 0.0  ;;  %v56_v38 = vsel %vm21_vm0, %v43_v36, 0.0 }
   0xc   :  { %v57_v39 = vadd.f32 %v56_v38, %v55_v37 }
   0xe   :  { %58 = vadd.xlane.f32.xlu1 %v57_v39 }
  0x94   :  { %v46_v41 = vpop.xlane.xlu0 %45 }
  0x95   :  { %v60_v42 = vmul.f32 0.001953125, %v46_v41 }
  0x96   :  { %v54_v43 = vpop.xlane.xlu1 %53 }
  0x97   :  { %v64_v44 = vmul.f32 %v60_v42, %v60_v42  ;;  %v62_v45 = vmul.f32 0.001953125, %v54_v43 }
  0x98   :  { %v51_v46 = vpop.xlane.xlu0 %50 }
  0x99   :  { %v66_v47 = vsub.f32 %v62_v45, %v64_v44  ;;  %v61_v48 = vmul.f32 0.001953125, %v51_v46 }
  0x9b   :  { %v68_v49 = vmax.f32 %v66_v47, 0.0  ;;  %v65_v50 = vmul.f32 %v61_v48, %v61_v48  ;;  %v59_v51 = vpop.xlane.xlu1 %58 }
  0x9c   :  { %v63_v52 = vmul.f32 0.001953125, %v59_v51 }
  0x9d   :  { %v70_v53 = vadd.f32 1e-05, %v68_v49 }
  0x9e   :  { %v67_v54 = vsub.f32 %v63_v52, %v65_v50 }
  0x9f   :  { %143 = vrsqrt.f32 %v70_v53 }
  0xa0   :  { %v69_v55 = vmax.f32 %v67_v54, 0.0 }
  0xa2   :  { %v71_v56 = vadd.f32 1e-05, %v69_v55 }
  0xa4   :  { %145 = vrsqrt.f32 %v71_v56 }
  0xa9   :  { %v144_v58 = vpop.eup %143 }
  0xaa   :  { %v78_v59 = vmul.f32 %v144_v58, %v74_v57 }
  0xac   :  { %86 = vperm.xlu0 %141, %v78_v59   ;;  %v80_v63 = vmul.f32 %v78_v59, %v60_v42 }
  0xae   :  { %v146_v61 = vpop.eup %145  ;;  %v82_v5 = vsub.f32 %v76_v4, %v80_v63 }
  0xaf   :  { %v79_v62 = vmul.f32 %v146_v61, %v75_v60 }
  0xb1   :  { %91 = vperm.xlu1 %142, %v79_v62   ;;  %v81_v6 = vmul.f32 %v79_v62, %v61_v48 }
  0xb3   :  { %v83_v10 = vsub.f32 %v77_v7, %v81_v6 }
  0xb5   :  { %104 = vperm.xlu1 %142, %v82_v5  }
  0xb9   :  { %109 = vperm.xlu1 %142, %v83_v10  }
 0x12b   :  { %v87_v11 = vpop.permute.xlu0 %86 }
 0x12c   :  { %v94_v15 = vmul.f32 %v87_v11, %v182_v0  ;;  %v95_v16 = vmul.f32 %v87_v11, %v187_v1  ;;  %v98_v17 = vmul.f32 %v87_v11, %v192_v2  ;;  %v99_v18 = vmul.f32 %v87_v11, %v197_v3 }
 0x130   :  { %v92_v14 = vpop.permute.xlu1 %91 }
 0x131   :  { %v96_v24 = vmul.f32 %v92_v14, %v210_v8  ;;  %v97_v25 = vmul.f32 %v92_v14, %v215_v9  ;;  %v100_v26 = vmul.f32 %v92_v14, %v224_v12  ;;  %v101_v0 = vmul.f32 %v92_v14, %v229_v13 }
 0x134   :  { %v105_v19 = vpop.permute.xlu1 %104 }
 0x135   :  { %v112_v20 = vadd.f32 %v105_v19, %v94_v15  ;;  %v113_v21 = vadd.f32 %v105_v19, %v95_v16  ;;  %v116_v22 = vadd.f32 %v105_v19, %v98_v17  ;;  %v117_v23 = vadd.f32 %v105_v19, %v99_v18 }
 0x137   :  { %147 = vtanh.f32 %v112_v20 }
 0x138   :  { %149 = vtanh.f32 %v113_v21  ;;  %v110_v1 = vpop.permute.xlu1 %109 }
 0x139   :  { %151 = vtanh.f32 %v116_v22  ;;  %v114_v2 = vadd.f32 %v110_v1, %v96_v24  ;;  %v115_v27 = vadd.f32 %v110_v1, %v97_v25  ;;  %v118_v3 = vadd.f32 %v110_v1, %v100_v26 }
 0x13a   :  { %153 = vtanh.f32 %v117_v23  ;;  %v119_v28 = vadd.f32 %v110_v1, %v101_v0 }
 0x13b   :  { %155 = vtanh.f32 %v114_v2 }
 0x13c   :  { %157 = vtanh.f32 %v115_v27 }
 0x13d   :  { %159 = vtanh.f32 %v118_v3 }
 0x13e   :  { %161 = vtanh.f32 %v119_v28 }
 0x141   :  { %v148_v29 = vpop.eup %147 }
 0x142   :  { %v150_v8 = vpop.eup %149  ;;  %128 = vst [vmem:[%s301_s2] sm:$0xff] %v148_v29 }
 0x143   :  { %v152_v9 = vpop.eup %151  ;;  %129 = vst [vmem:[%s301_s2 + $0x8] sm:$0xff] %v150_v8 }
 0x144   :  { %v154_v12 = vpop.eup %153  ;;  %132 = vst [vmem:[%s301_s2 + $0x20] sm:$0xff] %v152_v9 }
 0x145   :  { %v156_v13 = vpop.eup %155  ;;  %133 = vst [vmem:[%s301_s2 + $0x28] sm:$0xff] %v154_v12 }
 0x146   :  { %v158_v30 = vpop.eup %157  ;;  %130 = vst [vmem:[%s301_s2 + $0x10] sm:$0x1] %v156_v13 }
 0x147   :  { %v160_v31 = vpop.eup %159  ;;  %131 = vst [vmem:[%s301_s2 + $0x18] sm:$0x1] %v158_v30 }
 0x148   :  { %v162_v32 = vpop.eup %161  ;;  %134 = vst [vmem:[%s301_s2 + $0x30] sm:$0x1] %v160_v31 }
 0x149   :  { %135 = vst [vmem:[%s301_s2 + $0x38] sm:$0x1] %v162_v32 }

</bundles_post_ra>
